<compile_context>
chip_gen: v5e
topology: v5e:2x2
jax: 0.10.0
libtpu: 0.0.40
codegen_flags: <defaults>
</compile_context>

<pallas_src>
import functools

import jax
import jax.numpy as jnp
from jax.experimental import pallas as pl
from jax.experimental.pallas import tpu as pltpu


# ---------------------------------------------------------------------------
# Chip detection / generation-aware budgets
# ---------------------------------------------------------------------------

def _chip_info():
    """Return (physical VMEM bytes per core, is_v7x_class, has_bf16_valu)."""
    try:
        kind = jax.devices()[0].device_kind.lower()
    except Exception:
        kind = ""
    is_v7 = "v7" in kind
    bf16_valu = ("v6" in kind) or is_v7
    vmem = None
    try:
        info = pltpu.get_tpu_info()
        vmem = int(getattr(info, "vmem_capacity_bytes"))
    except Exception:
        vmem = None
    if vmem is None or vmem <= 0:
        vmem = (64 << 20) if is_v7 else (128 << 20)
    # 64 MiB-class VMEM => treat as v7x-class even if the kind string is odd.
    is_v7 = is_v7 or vmem <= (64 << 20) + (1 << 20)
    return vmem, is_v7, bf16_valu


def _budgets(vmem_phys, is_v7x):
    """(vmem_cap_bytes, x_block_cap_bytes, min_grid_steps) per generation."""
    if is_v7x:
        vmem_cap = min(48 << 20, max(vmem_phys - (8 << 20), 32 << 20))
        xblock_cap = 4 << 20
        min_steps = 4          # 2 TCs: give each core multiple steps to pipeline
    else:
        vmem_cap = min(96 << 20, max(vmem_phys - (32 << 20), 32 << 20))
        xblock_cap = 16 << 20
        min_steps = 1          # single TC: never halve the tile just for steps
    return vmem_cap, xblock_cap, min_steps


def _pick_tn(n, xblock_per_n, ws_per_n, xblock_cap, ws_cap, min_steps):
    """Largest valid batch-tile TN.

    TN must divide N and be a multiple of 8 (or equal N) so the (TN, C)
    channel-weight block satisfies the (8, 128) tiling rule and the fused
    avg/max concat stays sublane-aligned.  Returns None if even the smallest
    candidate exceeds the budgets (caller falls back to the two-phase path).
    """
    cands = [d for d in range(1, n + 1)
             if n % d == 0 and (d == n or d % 8 == 0)]
    fits = [d for d in cands
            if d * xblock_per_n <= xblock_cap and d * ws_per_n <= ws_cap]
    if not fits:
        return None
    fits.sort(reverse=True)
    for d in fits:                       # largest tile subject to enough steps
        if n // d >= min_steps:
            return d
    return fits[0]                       # can't reach min_steps; take largest


def _pick_thw(hw, c, itemsize, mul_itemsize, upcast_bytes, ws_cap, xblock_cap):
    """Spatial tile for the two-phase path: multiple of 128 (or full HW)."""
    per_col_ws = c * (4 * itemsize + 8 + mul_itemsize + upcast_bytes)
    per_col_blk = max(c * itemsize, 1)
    max_cols = min(max(ws_cap, 1) // max(per_col_ws, 1),
                   xblock_cap // per_col_blk)
    if max_cols >= hw:
        return hw
    return max((max_cols // 128) * 128, 128)


# ---------------------------------------------------------------------------
# Kernels
# ---------------------------------------------------------------------------

def _cbam_fused_kernel(x_ref, w1t_ref, b1_ref, w2t_ref, b2_ref, out_ref, cw_ref,
                       *, inv_hw, mul_dtype):
    """Whole-sample path: block = (TN, C, HW)."""
    x = x_ref[...]                                       # (TN, C, HW), I/O dtype
    tn = x.shape[0]

    # Pooled stats with f32 accumulation; no full-block upcast copy of x.
    avg = jnp.sum(x, axis=-1, dtype=jnp.float32) * inv_hw     # (TN, C)
    mx = jnp.max(x, axis=-1).astype(jnp.float32)              # (TN, C)

    # Fuse the avg/max branches so each FC layer is one matmul; pad each branch
    # to an 8-sublane boundary so the concat does not straddle sublane tiles.
    tn_pad = (-tn) % 8
    if tn_pad:
        zpad = jnp.zeros((tn_pad, avg.shape[1]), jnp.float32)
        pooled = jnp.concatenate([avg, zpad, mx, zpad], axis=0)
    else:
        pooled = jnp.concatenate([avg, mx], axis=0)
    tpad = tn + tn_pad

    h1 = jnp.maximum(
        jnp.dot(pooled, w1t_ref[...], preferred_element_type=jnp.float32)
        + b1_ref[...], 0.0)
    y = jnp.dot(h1, w2t_ref[...], preferred_element_type=jnp.float32) + b2_ref[...]

    cw = jax.nn.sigmoid(y[:tn] + y[tpad:tpad + tn])            # (TN, C) f32
    cw_ref[...] = cw.astype(cw_ref.dtype)                      # lane-dense (TN, C)

    # Broadcast multiply in mul_dtype (== I/O dtype on v6e/v7x; f32 on v5e or
    # f32 I/O): avoids full-block cast temporaries on the dominant stage.
    cw_m = cw.astype(mul_dtype)
    out_ref[...] = (x.astype(mul_dtype) * cw_m[:, :, None]).astype(out_ref.dtype)


def _cbam_pool_kernel(x_ref, w1t_ref, b1_ref, w2t_ref, b2_ref, cw_ref,
                      sum_acc, max_acc, *, hw_total, has_tail):
    """Two-phase pass 1: accumulate sum/max over HW tiles; FC stack at the end."""
    h = pl.program_id(1)

    @pl.when(h == 0)
    def _():
        sum_acc[...] = jnp.zeros_like(sum_acc)
        max_acc[...] = jnp.full_like(max_acc, -jnp.inf)

    x = x_ref[...]                                       # (1, C, THW), I/O dtype
    if has_tail:
        thw = x.shape[-1]
        col = jax.lax.broadcasted_iota(jnp.int32, x.shape, 2) + h * thw
        valid = col < hw_total
        x_sum = jnp.where(valid, x, jnp.zeros_like(x))
        x_max = jnp.where(valid, x, jnp.full_like(x, -jnp.inf))
    else:
        x_sum = x
        x_max = x

    sum_acc[...] += jnp.sum(x_sum, axis=-1, dtype=jnp.float32)       # (1, C)
    max_acc[...] = jnp.maximum(max_acc[...],
                               jnp.max(x_max, axis=-1).astype(jnp.float32))

    @pl.when(h == pl.num_programs(1) - 1)
    def _():
        avg = sum_acc[...] * (1.0 / hw_total)                        # (1, C)
        mx = max_acc[...]
        pooled = jnp.concatenate([avg, mx], axis=0)                  # (2, C)
        h1 = jnp.maximum(
            jnp.dot(pooled, w1t_ref[...], preferred_element_type=jnp.float32)
            + b1_ref[...], 0.0)
        y = jnp.dot(h1, w2t_ref[...], preferred_element_type=jnp.float32) \
            + b2_ref[...]
        cw = jax.nn.sigmoid(y[0:1] + y[1:2])                         # (1, C)
        cw_ref[...] = cw[:, None, :].astype(cw_ref.dtype)            # (1, 1, C)


def _cbam_mul_kernel(x_ref, cw_ref, out_ref, *, mul_dtype):
    """Two-phase pass 2: tiled broadcast multiply."""
    x = x_ref[...]                                       # (1, C, THW)
    cw = cw_ref[...].astype(mul_dtype)                   # (1, C, 1)
    out_ref[...] = (x.astype(mul_dtype) * cw).astype(out_ref.dtype)


# ---------------------------------------------------------------------------
# Wrappers
# ---------------------------------------------------------------------------

def _cbam_fused(x_flat, w1t, b1r, w2t, b2r, io_dtype, mul_dtype, tn,
                vmem_cap, donate_x):
    N, C, HW = x_flat.shape
    Cr = w1t.shape[1]
    itemsize = jnp.dtype(io_dtype).itemsize
    mul_item = jnp.dtype(mul_dtype).itemsize
    upcast = 4 if mul_dtype != io_dtype else 0

    # Working set: 2x in-blocks + 2x out-blocks (double buffered) + multiply
    # temp (+ f32 upcast copy if the multiply must run in f32 on narrow I/O).
    ws_bytes = tn * C * HW * (4 * itemsize + mul_item + upcast)
    vmem_limit = int(min(max(ws_bytes + (4 << 20), 32 << 20), vmem_cap))

    kernel = functools.partial(_cbam_fused_kernel, inv_hw=1.0 / HW,
                               mul_dtype=mul_dtype)
    cost = pl.CostEstimate(
        flops=2 * (2 * N) * C * Cr * 2 + 3 * N * C * HW,
        transcendentals=N * C,
        bytes_accessed=2 * N * C * HW * itemsize + N * C * 4
        + (2 * C * Cr + C + Cr) * 4,
    )

    out_flat, cw_nc = pl.pallas_call(
        kernel,
        out_shape=(
            jax.ShapeDtypeStruct((N, C, HW), io_dtype),
            jax.ShapeDtypeStruct((N, C), jnp.float32),
        ),
        grid_spec=pltpu.PrefetchScalarGridSpec(
            num_scalar_prefetch=0,
            grid=(N // tn,),
            in_specs=[
                pl.BlockSpec((tn, C, HW), lambda n: (n, 0, 0)),
                pl.BlockSpec((C, Cr), lambda n: (0, 0)),
                pl.BlockSpec((1, Cr), lambda n: (0, 0)),
                pl.BlockSpec((Cr, C), lambda n: (0, 0)),
                pl.BlockSpec((1, C), lambda n: (0, 0)),
            ],
            out_specs=[
                pl.BlockSpec((tn, C, HW), lambda n: (n, 0, 0)),
                pl.BlockSpec((tn, C), lambda n: (n, 0)),
            ],
        ),
        compiler_params=pltpu.CompilerParams(
            dimension_semantics=("parallel",),
            vmem_limit_bytes=vmem_limit,
        ),
        cost_estimate=cost,
        input_output_aliases=({0: 0} if donate_x else {}),
    )(x_flat, w1t, b1r, w2t, b2r)
    return out_flat, cw_nc


def _cbam_two_phase(x_flat, w1t, b1r, w2t, b2r, io_dtype, mul_dtype,
                    vmem_cap, xblock_cap, thw=None, donate_x=False):
    """HW-tiled fallback for samples whose (C, HW) slab exceeds the VMEM budget."""
    N, C, HW = x_flat.shape
    Cr = w1t.shape[1]
    itemsize = jnp.dtype(io_dtype).itemsize
    mul_item = jnp.dtype(mul_dtype).itemsize
    upcast = 4 if mul_dtype != io_dtype else 0

    if thw is None:
        thw = _pick_thw(HW, C, itemsize, mul_item, upcast,
                        vmem_cap - (4 << 20), xblock_cap)
    else:
        thw = min(int(thw), HW)
        if thw < HW:
            thw = max((thw // 128) * 128, 128)
    n_hw = pl.cdiv(HW, thw)
    has_tail = (HW % thw) != 0

    xblk = C * thw * itemsize
    xblk_f32 = C * thw * 4

    # ---- pass 1: pooled stats + FC stack -> channel weights (N, 1, C) f32
    pool_kernel = functools.partial(_cbam_pool_kernel, hw_total=HW,
                                    has_tail=has_tail)
    vmem1 = int(min(max(2 * xblk + 2 * xblk_f32 + (4 << 20), 32 << 20), vmem_cap))
    cw_p1 = pl.pallas_call(
        pool_kernel,
        out_shape=jax.ShapeDtypeStruct((N, 1, C), jnp.float32),
        grid_spec=pltpu.PrefetchScalarGridSpec(
            num_scalar_prefetch=0,
            grid=(N, n_hw),
            in_specs=[
                pl.BlockSpec((1, C, thw), lambda n, h: (n, 0, h)),
                pl.BlockSpec((C, Cr), lambda n, h: (0, 0)),
                pl.BlockSpec((1, Cr), lambda n, h: (0, 0)),
                pl.BlockSpec((Cr, C), lambda n, h: (0, 0)),
                pl.BlockSpec((1, C), lambda n, h: (0, 0)),
            ],
            out_specs=pl.BlockSpec((1, 1, C), lambda n, h: (n, 0, 0)),
            scratch_shapes=[pltpu.VMEM((1, C), jnp.float32),
                            pltpu.VMEM((1, C), jnp.float32)],
        ),
        compiler_params=pltpu.CompilerParams(
            dimension_semantics=("parallel", "arbitrary"),
            vmem_limit_bytes=vmem1,
        ),
        cost_estimate=pl.CostEstimate(
            flops=2 * N * C * HW + 2 * (2 * N) * C * Cr * 2,
            transcendentals=N * C,
            bytes_accessed=N * C * HW * itemsize + N * C * 4),
    )(x_flat, w1t, b1r, w2t, b2r)

    cw_nc = cw_p1.reshape(N, C)            # lane-dense (N, C) channel weights
    cw_bcast = cw_nc.reshape(N, C, 1)      # tiny relayout outside the kernel

    # ---- pass 2: tiled broadcast multiply
    mul_kernel = functools.partial(_cbam_mul_kernel, mul_dtype=mul_dtype)
    vmem2 = int(min(max(4 * xblk + C * thw * (mul_item + upcast) + (4 << 20),
                        32 << 20), vmem_cap))
    out_flat = pl.pallas_call(
        mul_kernel,
        out_shape=jax.ShapeDtypeStruct((N, C, HW), io_dtype),
        grid_spec=pltpu.PrefetchScalarGridSpec(
            num_scalar_prefetch=0,
            grid=(N, n_hw),
            in_specs=[
                pl.BlockSpec((1, C, thw), lambda n, h: (n, 0, h)),
                pl.BlockSpec((1, C, 1), lambda n, h: (n, 0, 0)),
            ],
            out_specs=pl.BlockSpec((1, C, thw), lambda n, h: (n, 0, h)),
        ),
        compiler_params=pltpu.CompilerParams(
            dimension_semantics=("parallel", "parallel"),
            vmem_limit_bytes=vmem2,
        ),
        cost_estimate=pl.CostEstimate(
            flops=N * C * HW,
            transcendentals=0,
            bytes_accessed=2 * N * C * HW * itemsize + N * C * 4),
        input_output_aliases=({0: 0} if donate_x else {}),
    )(x_flat, cw_bcast)

    return out_flat, cw_nc


def cbam_forward(x_nchw, w1, b1, w2, b2, io_dtype=None, *,
                 donate_x=False, force_two_phase=False, thw=None):
    """x_nchw: (N, C, H, W).  Returns (out (N,C,H,W), channel_weight (N,C,1,1) f32)."""
    N, C, H, W = x_nchw.shape
    HW = H * W
    Cr = w1.shape[0]

    io_dtype = jnp.dtype(x_nchw.dtype if io_dtype is None else io_dtype)
    x_flat = x_nchw.reshape(N, C, HW).astype(io_dtype)

    # Pre-transpose weights (no in-kernel XLU transpose); lane-dense biases.
    w1t = jnp.asarray(w1, jnp.float32).T               # (C, Cr)
    w2t = jnp.asarray(w2, jnp.float32).T               # (Cr, C)
    b1r = jnp.asarray(b1, jnp.float32).reshape(1, Cr)
    b2r = jnp.asarray(b2, jnp.float32).reshape(1, C)

    vmem_phys, is_v7x, bf16_valu = _chip_info()
    vmem_cap, xblock_cap, min_steps = _budgets(vmem_phys, is_v7x)

    # Multiply dtype: I/O dtype where the VPU supports it (v6e/v7x bf16);
    # f32 on v5e-and-older / unknown chips (no bf16 VALU).
    if io_dtype == jnp.dtype(jnp.float32):
        mul_dtype = jnp.dtype(jnp.float32)
    else:
        mul_dtype = io_dtype if bf16_valu else jnp.dtype(jnp.float32)

    itemsize = jnp.dtype(io_dtype).itemsize
    mul_item = jnp.dtype(mul_dtype).itemsize
    upcast = 4 if mul_dtype != io_dtype else 0

    xblock_per_n = C * HW * itemsize
    ws_per_n = C * HW * (4 * itemsize + mul_item + upcast)

    tn = None
    if not force_two_phase:
        tn = _pick_tn(N, xblock_per_n, ws_per_n,
                      xblock_cap, vmem_cap - (4 << 20), min_steps)

    if tn is None:
        out_flat, cw_nc = _cbam_two_phase(
            x_flat, w1t, b1r, w2t, b2r, io_dtype, mul_dtype,
            vmem_cap, xblock_cap, thw=thw, donate_x=donate_x)
    else:
        out_flat, cw_nc = _cbam_fused(
            x_flat, w1t, b1r, w2t, b2r, io_dtype, mul_dtype, tn,
            vmem_cap, donate_x)

    out = out_flat.reshape(N, C, H, W)
    channel_weight = cw_nc.astype(jnp.float32).reshape(N, C, 1, 1)
    return out, channel_weight


def reference_forward(x, w1, b1, w2, b2):
    """Plain-JAX reference mirroring the PyTorch forward (1x1 convs == matmuls)."""
    avg = jnp.mean(x, axis=(2, 3))                      # (N, C)
    mx = jnp.max(x, axis=(2, 3))                        # (N, C)
    a = jnp.maximum(avg @ w1.T + b1, 0.0)
    m = jnp.maximum(mx @ w1.T + b1, 0.0)
    a2 = a @ w2.T + b2
    m2 = m @ w2.T + b2
    cw = jax.nn.sigmoid(a2 + m2)                        # (N, C)
    cw = cw[:, :, None, None]
    return x * cw, cw


if __name__ == "__main__":
    # Module config: channels=4, reduction=2 -> hidden = 2
    N, C, H, W = 2, 4, 16, 16
    reduction = 2
    Cr = C // reduction

    key = jax.random.PRNGKey(0)
    kx, kw1, kb1, kw2, kb2, kx2 = jax.random.split(key, 6)

    x = jax.random.normal(kx, (N, C, H, W), dtype=jnp.float32)
    # fc1: Conv2d(C, C//r, 1) -> weight (Cr, C), bias (Cr,)
    w1 = jax.random.normal(kw1, (Cr, C), dtype=jnp.float32) * 0.5
    b1 = jax.random.normal(kb1, (Cr,), dtype=jnp.float32) * 0.1
    # fc2: Conv2d(C//r, C, 1) -> weight (C, Cr), bias (C,)
    w2 = jax.random.normal(kw2, (C, Cr), dtype=jnp.float32) * 0.5
    b2 = jax.random.normal(kb2, (C,), dtype=jnp.float32) * 0.1

    ref_out, ref_cw = reference_forward(x, w1, b1, w2, b2)

    # 1) fused path, f32 I/O: exact-path correctness check.
    out, cw = cbam_forward(x, w1, b1, w2, b2)
    jax.block_until_ready((out, cw))
    assert out.shape == (N, C, H, W) and cw.shape == (N, C, 1, 1)
    assert jnp.allclose(out, ref_out, atol=1e-5, rtol=1e-5)
    assert jnp.allclose(jnp.squeeze(cw), jnp.squeeze(ref_cw), atol=1e-5, rtol=1e-5)

    # 2) fused path, bf16 I/O (halves HBM traffic on v6e/v7x); loose tolerance.
    out_bf, cw_bf = cbam_forward(x, w1, b1, w2, b2, io_dtype=jnp.bfloat16)
    jax.block_until_ready((out_bf, cw_bf))
    assert jnp.allclose(out_bf.astype(jnp.float32), ref_out, atol=0.1, rtol=0.1)
    assert jnp.allclose(jnp.squeeze(cw_bf), jnp.squeeze(ref_cw), atol=0.05, rtol=0.05)

    # 3) two-phase HW-tiled fallback (forced), evenly divisible tiling.
    out_tp, cw_tp = cbam_forward(x, w1, b1, w2, b2,
                                 force_two_phase=True, thw=128)
    jax.block_until_ready((out_tp, cw_tp))
    assert jnp.allclose(out_tp, ref_out, atol=1e-5, rtol=1e-5)
    assert jnp.allclose(jnp.squeeze(cw_tp), jnp.squeeze(ref_cw), atol=1e-5, rtol=1e-5)

    # 4) two-phase path with an HW remainder (18*18 = 324 = 2*128 + 68):
    #    exercises the in-kernel tail masking and Pallas partial-block stores.
    x2 = jax.random.normal(kx2, (N, C, 18, 18), dtype=jnp.float32)
    ref_out2, ref_cw2 = reference_forward(x2, w1, b1, w2, b2)
    out2, cw2 = cbam_forward(x2, w1, b1, w2, b2, force_two_phase=True, thw=128)
    jax.block_until_ready((out2, cw2))
    assert jnp.allclose(out2, ref_out2, atol=1e-5, rtol=1e-5)
    assert jnp.allclose(jnp.squeeze(cw2), jnp.squeeze(ref_cw2), atol=1e-5, rtol=1e-5)

    print("KERNEL_OK")
</pallas_src>

<mosaic_0001>
module attributes {stable_mosaic.version = 11 : i64} {
  func.func @_cbam_fused_kernel(%arg0: i32, %arg1: memref<2x4x256xf32, #tpu.memory_space<vmem>>, %arg2: memref<4x2xf32, #tpu.memory_space<vmem>>, %arg3: memref<1x2xf32, #tpu.memory_space<vmem>>, %arg4: memref<2x4xf32, #tpu.memory_space<vmem>>, %arg5: memref<1x4xf32, #tpu.memory_space<vmem>>, %arg6: memref<2x4x256xf32, #tpu.memory_space<vmem>>, %arg7: memref<2x4xf32, #tpu.memory_space<vmem>>) attributes {dimension_semantics = [#tpu.dimension_semantics<parallel>], iteration_bounds = array<i64: 1>, scalar_prefetch = 0 : i64, scratch_operands = 0 : i64, tpu.core_type = #tpu.core_type<tc>, window_params = [{transform_indices = @transform_0, window_bounds = array<i64: 2, 4, 256>}, {pipeline_mode = #tpu.pipeline_mode<synchronous>, transform_indices = @transform_1, window_bounds = array<i64: 4, 2>}, {pipeline_mode = #tpu.pipeline_mode<synchronous>, transform_indices = @transform_2, window_bounds = array<i64: 1, 2>}, {pipeline_mode = #tpu.pipeline_mode<synchronous>, transform_indices = @transform_3, window_bounds = array<i64: 2, 4>}, {pipeline_mode = #tpu.pipeline_mode<synchronous>, transform_indices = @transform_4, window_bounds = array<i64: 1, 4>}, {transform_indices = @transform_5, window_bounds = array<i64: 2, 4, 256>}, {transform_indices = @transform_6, window_bounds = array<i64: 2, 4>}]} {
    %c0 = arith.constant 0 : index
    %c0_0 = arith.constant 0 : index
    %c0_1 = arith.constant 0 : index
    %0 = vector.load %arg1[%c0, %c0_0, %c0_1] : memref<2x4x256xf32, #tpu.memory_space<vmem>>, vector<2x4x256xf32>
    %cst = arith.constant dense<0.000000e+00> : vector<2x4xf32>
    %1 = vector.multi_reduction <add>, %0, %cst [2] : vector<2x4x256xf32> to vector<2x4xf32>
    %cst_2 = arith.constant 3.906250e-03 : f32
    %2 = vector.broadcast %cst_2 : f32 to vector<2x4xf32>
    %3 = arith.mulf %1, %2 : vector<2x4xf32>
    %cst_3 = arith.constant dense<0xFF800000> : vector<2x4xf32>
    %4 = vector.multi_reduction <maximumf>, %0, %cst_3 [2] : vector<2x4x256xf32> to vector<2x4xf32>
    %cst_4 = arith.constant 0.000000e+00 : f32
    %5 = vector.broadcast %cst_4 : f32 to vector<6x4xf32>
    %6 = tpu.concatenate %3, %5, %4, %5 in 0 : vector<2x4xf32>, vector<6x4xf32>, vector<2x4xf32>, vector<6x4xf32> -> vector<16x4xf32>
    %c0_5 = arith.constant 0 : index
    %c0_6 = arith.constant 0 : index
    %7 = vector.load %arg2[%c0_5, %c0_6] : memref<4x2xf32, #tpu.memory_space<vmem>>, vector<4x2xf32>
    %cst_7 = arith.constant dense<0.000000e+00> : vector<16x2xf32>
    %8 = tpu.matmul %6, %7, %cst_7 {dimension_numbers = #tpu.dot_dimension_numbers<[1], [0], [0], [1], [0, 0, 1, 1], [], []>} : vector<16x4xf32>, vector<4x2xf32>, vector<16x2xf32> -> vector<16x2xf32>
    %c0_8 = arith.constant 0 : index
    %c0_9 = arith.constant 0 : index
    %9 = vector.load %arg3[%c0_8, %c0_9] : memref<1x2xf32, #tpu.memory_space<vmem>>, vector<1x2xf32>
    %10 = vector.broadcast %9 : vector<1x2xf32> to vector<16x2xf32>
    %11 = arith.addf %8, %10 : vector<16x2xf32>
    %cst_10 = arith.constant 0.000000e+00 : f32
    %12 = vector.broadcast %cst_10 : f32 to vector<16x2xf32>
    %13 = arith.maximumf %11, %12 : vector<16x2xf32>
    %c0_11 = arith.constant 0 : index
    %c0_12 = arith.constant 0 : index
    %14 = vector.load %arg4[%c0_11, %c0_12] : memref<2x4xf32, #tpu.memory_space<vmem>>, vector<2x4xf32>
    %cst_13 = arith.constant dense<0.000000e+00> : vector<16x4xf32>
    %15 = tpu.matmul %13, %14, %cst_13 {dimension_numbers = #tpu.dot_dimension_numbers<[1], [0], [0], [1], [0, 0, 1, 1], [], []>} : vector<16x2xf32>, vector<2x4xf32>, vector<16x4xf32> -> vector<16x4xf32>
    %c0_14 = arith.constant 0 : index
    %c0_15 = arith.constant 0 : index
    %16 = vector.load %arg5[%c0_14, %c0_15] : memref<1x4xf32, #tpu.memory_space<vmem>>, vector<1x4xf32>
    %17 = vector.broadcast %16 : vector<1x4xf32> to vector<16x4xf32>
    %18 = arith.addf %15, %17 : vector<16x4xf32>
    %19 = vector.extract_strided_slice %18 {offsets = [0, 0], sizes = [2, 4], strides = [1, 1]} : vector<16x4xf32> to vector<2x4xf32>
    %20 = vector.extract_strided_slice %18 {offsets = [8, 0], sizes = [2, 4], strides = [1, 1]} : vector<16x4xf32> to vector<2x4xf32>
    %21 = arith.addf %19, %20 : vector<2x4xf32>
    %22 = arith.negf %21 : vector<2x4xf32>
    %23 = math.exp %22 : vector<2x4xf32>
    %cst_16 = arith.constant 1.000000e+00 : f32
    %24 = vector.broadcast %cst_16 : f32 to vector<2x4xf32>
    %25 = arith.addf %24, %23 : vector<2x4xf32>
    %26 = arith.divf %24, %25 : vector<2x4xf32>
    %c0_17 = arith.constant 0 : index
    %c0_18 = arith.constant 0 : index
    %27 = vector.load %arg7[%c0_17, %c0_18] : memref<2x4xf32, #tpu.memory_space<vmem>>, vector<2x4xf32>
    tpu.vector_store %arg7[%c0_17, %c0_18], %26 {strides = array<i32>} : memref<2x4xf32, #tpu.memory_space<vmem>>, vector<2x4xf32>,
    %28 = vector.shape_cast %26 : vector<2x4xf32> to vector<2x4x1xf32>
    %29 = vector.broadcast %28 : vector<2x4x1xf32> to vector<2x4x256xf32>
    %30 = arith.mulf %0, %29 : vector<2x4x256xf32>
    %c0_19 = arith.constant 0 : index
    %c0_20 = arith.constant 0 : index
    %c0_21 = arith.constant 0 : index
    %31 = vector.load %arg6[%c0_19, %c0_20, %c0_21] : memref<2x4x256xf32, #tpu.memory_space<vmem>>, vector<2x4x256xf32>
    tpu.vector_store %arg6[%c0_19, %c0_20, %c0_21], %30 {strides = array<i32>} : memref<2x4x256xf32, #tpu.memory_space<vmem>>, vector<2x4x256xf32>,
    return
  }
  func.func @transform_0(%arg0: i32) -> (i32, i32, i32) {
    %c0_i32 = arith.constant 0 : i32
    %c0_i32_0 = arith.constant 0 : i32
    %c0_i32_1 = arith.constant 0 : i32
    return %arg0, %c0_i32, %c0_i32_0 : i32, i32, i32
  }
  func.func @transform_1(%arg0: i32) -> (i32, i32) {
    %c0_i32 = arith.constant 0 : i32
    %c0_i32_0 = arith.constant 0 : i32
    %c0_i32_1 = arith.constant 0 : i32
    return %c0_i32, %c0_i32_0 : i32, i32
  }
  func.func @transform_2(%arg0: i32) -> (i32, i32) {
    %c0_i32 = arith.constant 0 : i32
    %c0_i32_0 = arith.constant 0 : i32
    %c0_i32_1 = arith.constant 0 : i32
    return %c0_i32, %c0_i32_0 : i32, i32
  }
  func.func @transform_3(%arg0: i32) -> (i32, i32) {
    %c0_i32 = arith.constant 0 : i32
    %c0_i32_0 = arith.constant 0 : i32
    %c0_i32_1 = arith.constant 0 : i32
    return %c0_i32, %c0_i32_0 : i32, i32
  }
  func.func @transform_4(%arg0: i32) -> (i32, i32) {
    %c0_i32 = arith.constant 0 : i32
    %c0_i32_0 = arith.constant 0 : i32
    %c0_i32_1 = arith.constant 0 : i32
    return %c0_i32, %c0_i32_0 : i32, i32
  }
  func.func @transform_5(%arg0: i32) -> (i32, i32, i32) {
    %c0_i32 = arith.constant 0 : i32
    %c0_i32_0 = arith.constant 0 : i32
    %c0_i32_1 = arith.constant 0 : i32
    return %arg0, %c0_i32, %c0_i32_0 : i32, i32, i32
  }
  func.func @transform_6(%arg0: i32) -> (i32, i32) {
    %c0_i32 = arith.constant 0 : i32
    %c0_i32_0 = arith.constant 0 : i32
    return %arg0, %c0_i32 : i32, i32
  }
}

</mosaic_0001>

<bundles_post_ra>
// kernel: tpu_custom_call.1
= control target key start
LH: loop header
LB: loop body
LE: loop exit
PB: predicated region body
PF: predicated region fallthrough
CT: control target
= control target key end

     0   :  { %12 = vsyncpa [#allocation3], 0  ;;  %s461_s0 = inlined_call_operand.hbm [shape: f32[2,4,256], index: 0, kind: input, shape index: {}]   ;;  %s462_s1 = inlined_call_operand.vmem [shape: f32[4,2], index: 1, kind: input, shape index: {}]   ;;  %s463_s2 = inlined_call_operand.vmem [shape: f32[1,2], index: 2, kind: input, shape index: {}]   ;;  %s464_s3 = inlined_call_operand.vmem [shape: f32[2,4], index: 3, kind: input, shape index: {}]   ;;  %s465_s4 = inlined_call_operand.vmem [shape: f32[1,4], index: 4, kind: input, shape index: {}]   ;;  %s466_s5 = inlined_call_operand.hbm [shape: f32[2,4,256], index: 5, kind: output, shape index: {0}]   ;;  %s467_s6 = inlined_call_operand.hbm [shape: f32[2,4], index: 6, kind: output, shape index: {1}]  }
   0x1   :  { %13 = vsyncpa [#allocation4], 0 }
   0x2   :  { %14 = vsyncpa [#allocation7], 0  ;;  %s19_s23 = sshll.u32 %s461_s0, 4  ;;  %s373_s24 = smov [#allocation2]   ;;  %s20_s23 = int_to_ptr.hbm [resolvable:$true] %s19_s23 }
   0x3   :  { %s21_s25 = sshll.u32 %s373_s24, 4  ;;  %s374_s26 = smov 128   ;;  %s22_s25 = int_to_ptr.vmem [resolvable:$true] %s21_s25 }
   0x4   :  { %s375_s27 = smov 8  }
   0x5   :  { %27 = dma.hbm_to_vmem [thread:$0]  %s20_s23, 256, %s22_s25, [#allocation3], %s374_s26, %s374_s26, %s375_s27  }
   0x6   :  { %367 = dma.done.wait [#allocation3], 256  }
   0x7   :  { %368 = vsyncadd [#allocation3], 4294967040  ;;  %v420_v0 = vld [vmem:[#allocation2] sm:$0xff]  ;;  %v422_v1 = vld [vmem:[#allocation2 + $0x8] sm:$0xff]  ;;  %vm55_vm0 = vcmask 1043456   ;;  %v91_v24 = vlaneseq  ;;  %vm95_vm1 = vcmask 1041409  }
   0x8   :  { %44 = vst [vmem:[#allocation1] ss:$2 sm:$0xff] %v420_v0  ;;  %v107_v22 = vld [vmem:[%s462_s1] sm:$0xf]  ;;  %vm104_vm2 = vcmask 1041408   ;;  %vm112_vm3 = vcmask 31744  }
   0x9   :  { %48 = vst [vmem:[#allocation1 + $0x10] ss:$2 sm:$0xff] %v422_v1  ;;  %279 = vmatpush.msk.msra.mxu2 %vm55_vm0, %v107_v22  ;;  %272 = vmatpush.msk.msra.mxu0 %vm55_vm0, %v107_v22  ;;  %v92_v26 = vand.u32 127, %v91_v24  ;;  %v147_v39 = vld [vmem:[%s464_s3] sm:$0x3]  ;;  %vm152_vm4 = vcmask 15360  }
   0xa   :  { %275 = vmatpush.msk.msra.mxu1 %vm104_vm2, %v147_v39  ;;  %280 = vmatpush.msk.msra.mxu3 %vm104_vm2, %v147_v39  ;;  %v289_v40 = vld [vmem:[%s463_s2] ss:$0 sm:$0xff]  ;;  %v209_v47 = vshrl.u32 %v91_v24, 7  ;;  %s376_s2 = smov [#allocation6]   ;;  %s257_s11 = sshll.u32 %s467_s6, 4  ;;  %vm205_vm8 = vcmask 25600   ;;  %s258_s11 = int_to_ptr.hbm [resolvable:$true] %s257_s11 }
   0xb   :  { %v290_v48 = vld [vmem:[%s465_s4] ss:$0 sm:$0xff]  ;;  %s255_s9 = sshll.u32 %s376_s2, 4  ;;  %s378_s6 = smov [#allocation5]   ;;  %s256_s9 = int_to_ptr.vmem [resolvable:$true] %s255_s9 }
   0xc   :  { %287 = vset.pattern.permute.xlu2 %v209_v47  ;;  %288 = vset.pattern.permute.xlu0 %v209_v47  ;;  %s241_s12 = sshll.u32 %s378_s6, 4  ;;  %s243_s15 = sshll.u32 %s466_s5, 4  ;;  %s242_s12 = int_to_ptr.vmem [resolvable:$true] %s241_s12  ;;  %s244_s15 = int_to_ptr.hbm [resolvable:$true] %s243_s15 }
   0xf   :  { %v45_v2 = vld.sshfl [vmem:[#allocation1] sm:$0xff pattern:$0x75316420]  ;;  %v46_v3 = vld.sshfl [vmem:[#allocation1 + $0x8] sm:$0xff pattern:$0x75316420] }
  0x10   :  { %68 = vst [vmem:[#allocation1] ss:$2 sm:$0xff] %v420_v0  ;;  %v56_v4 = vsel %vm55_vm0, %v45_v2, 0.0  ;;  %v57_v5 = vsel %vm55_vm0, %v46_v3, 0.0 }
  0x11   :  { %v58_v6 = vadd.f32 %v57_v5, %v56_v4  ;;  %v49_v7 = vld.sshfl [vmem:[#allocation1 + $0x10] sm:$0xff pattern:$0x75316420]  ;;  %v50_v8 = vld.sshfl [vmem:[#allocation1 + $0x18] sm:$0xff pattern:$0x75316420] }
  0x12   :  { %72 = vst [vmem:[#allocation1 + $0x10] ss:$2 sm:$0xff] %v422_v1  ;;  %v61_v9 = vsel %vm55_vm0, %v49_v7, 0.0  ;;  %v62_v10 = vsel %vm55_vm0, %v50_v8, 0.0  ;;  %v377_v7 = vmov 839922192  }
  0x13   :  { %59 = vadd.xlane.f32.xlu1 %v58_v6  ;;  %v63_v13 = vadd.f32 %v62_v10, %v61_v9  ;;  %v224_v8 = vunpack.c.l.s4 %v377_v7 }
  0x15   :  { %v225_v9 = vunpack.c.0.s8 %v224_v8 }
  0x17   :  { %v69_v11 = vld.sshfl [vmem:[#allocation1] sm:$0xff pattern:$0x75316420]  ;;  %v70_v12 = vld.sshfl [vmem:[#allocation1 + $0x8] sm:$0xff pattern:$0x75316420] }
  0x18   :  { %v79_v14 = vsel %vm55_vm0, %v69_v11, -inf  ;;  %v80_v15 = vsel %vm55_vm0, %v70_v12, -inf }
  0x19   :  { %v81_v16 = vmax.f32 %v79_v14, %v80_v15  ;;  %v73_v17 = vld.sshfl [vmem:[#allocation1 + $0x10] sm:$0xff pattern:$0x75316420]  ;;  %v74_v18 = vld.sshfl [vmem:[#allocation1 + $0x18] sm:$0xff pattern:$0x75316420] }
  0x1a   :  { %v84_v19 = vsel %vm55_vm0, %v73_v17, -inf  ;;  %v85_v20 = vsel %vm55_vm0, %v74_v18, -inf }
  0x1b   :  { %82 = vmax.xlane.f32.xlu0 %v81_v16  ;;  %64 = vadd.xlane.f32.xlu1 %v63_v13  ;;  %v86_v21 = vmax.f32 %v84_v19, %v85_v20 }
  0x23   :  { %87 = vmax.xlane.f32.xlu0 %v86_v21 }
  0x86   :  { %v60_v23 = vpop.xlane.xlu1 %59 }
  0x87   :  { %v66_v25 = vmul.f32 0.00390625, %v60_v23 }
  0x89   :  { %v93_v29 = vperm.slane %v66_v25, %v92_v26 }
  0x8e   :  { %v83_v27 = vpop.xlane.xlu0 %82  ;;  %v65_v28 = vpop.xlane.xlu1 %64 }
  0x8f   :  { %v67_v30 = vmul.f32 0.00390625, %v65_v28  ;;  %v100_v35 = vperm.slane %v83_v27, %v92_v26 }
  0x91   :  { %v94_v31 = vperm.slane %v67_v30, %v92_v26 }
  0x93   :  { %v96_v32 = vsel %vm95_vm1, %v94_v31, %v93_v29 }
  0x94   :  { %v105_v33 = vsel %vm104_vm2, %v96_v32, 0.0 }
  0x95   :  { %273 = vmatmul.msk.f32.vlgmr.msra.gmra.mxu0 %vm112_vm3, %v105_v33 }
  0x96   :  { %v88_v34 = vpop.xlane.xlu0 %87 }
  0x97   :  { %v101_v36 = vperm.slane %v88_v34, %v92_v26 }
  0x99   :  { %v102_v37 = vsel %vm95_vm1, %v101_v36, %v100_v35 }
  0x9a   :  { %v106_v38 = vsel %vm104_vm2, %v102_v37, 0.0 }
  0x9b   :  { %274 = vmatmul.msk.f32.vlgmr.msra.gmra.mxu2 %vm112_vm3, %v106_v38 }
 0x112   :  { %v139_v41 = vpop.f32.mrf.mxu0 }
 0x113   :  { %v140_v42 = vadd.f32 %v289_v40, %v139_v41 }
 0x115   :  { %v145_v43 = vmax.f32 %v140_v42, 0.0 }
 0x117   :  { %276 = vmatmul.msk.f32.vlgmr.msra.gmra.mxu1 %vm152_vm4, %v145_v43 }
 0x11e   :  { %v142_v44 = vpop.f32.mrf.mxu2 }
 0x11f   :  { %v143_v45 = vadd.f32 %v289_v40, %v142_v44 }
 0x121   :  { %v146_v46 = vmax.f32 %v143_v45, 0.0 }
 0x123   :  { %277 = vmatmul.msk.f32.vlgmr.msra.gmra.mxu3 %vm152_vm4, %v146_v46 }
 0x194   :  { %v179_v49 = vpop.f32.mrf.mxu1 }
 0x195   :  { %v180_v51 = vadd.f32 %v290_v48, %v179_v49 }
 0x1a6   :  { %v182_v50 = vpop.f32.mrf.mxu3 }
 0x1a7   :  { %v183_v52 = vadd.f32 %v290_v48, %v182_v50 }
 0x1a9   :  { %v185_v53 = vadd.f32 %v183_v52, %v180_v51 }
 0x1ab   :  { %v278_v54 = vmul.f32 -1.442695, %v185_v53 }
 0x1ad   :  { %291 = vpow2.f32 %v278_v54 }
 0x1b3   :  { %v292_v55 = vpop.eup %291 }
 0x1b4   :  { %v189_v56 = vadd.f32 1.0, %v292_v55 }
 0x1b6   :  { %293 = vrcp.f32 %v189_v56  ;;  %v201_v60 = vand.u32 2147483648, %v189_v56  ;;  %v199_v62 = vand.u32 2147483647, %v189_v56  ;;  %vm195_vm6 = vweird.f32 %v189_v56 }
 0x1b8   :  { %v202_v2 = vor.u32 1.1754944e-38, %v201_v60  ;;  %vm200_vm9 = vcmp.eq.f32.partialorder %v199_v62, 8.507059e+37 }
 0x1bc   :  { %v294_v57 = vpop.eup %293 }
 0x1bd   :  { %v191_v58 = vmul.f32 %v294_v57, %v189_v56  ;;  %vm196_vm5 = vweird.f32 %v294_v57 }
 0x1be   :  { %vm197_vm7 = vmor %vm195_vm6, %vm196_vm5 }
 0x1bf   :  { %v192_v59 = vsub.f32 1.0, %v191_v58 }
 0x1c1   :  { %v193_v61 = vmul.f32 %v294_v57, %v192_v59 }
 0x1c3   :  { %v194_v63 = vadd.f32 %v294_v57, %v193_v61 }
 0x1c5   :  { %v198_v3 = vsel %vm197_vm7, %v294_v57, %v194_v63 }
 0x1c6   :  { %v203_v4 = vsel %vm200_vm9, %v202_v2, %v198_v3 }
 0x1c7   :  { %v207_v5 = vperm.slane %v203_v4, 0  ;;  %206 = vst.msk [vmem:[#allocation6] sm:$0x3] %vm205_vm8, %v203_v4  ;;  %v214_v6 = vperm.slane %v203_v4, 1 }
 0x1c8   :  { %260 = dma.vmem_to_hbm [thread:$0]  %s256_s9, 32, %s258_s11, [#allocation7]  }
 0x1c9   :  { %212 = vperm.xlu2 %287, %v207_v5  }
 0x1d1   :  { %219 = vperm.xlu2 %287, %v214_v6  }
 0x223   :  { %v213_v10 = vpop.permute.xlu2 %212 }
 0x224   :  { %v226_v11 = vperm.slane %v213_v10, %v225_v9 }
 0x226   :  { %v233_v12 = vmul.f32 %v226_v11, %v420_v0 }
 0x228   :  { %235 = vst [vmem:[#allocation5] sm:$0xff] %v233_v12 }
 0x22b   :  { %v220_v13 = vpop.permute.xlu2 %219 }
 0x22c   :  { %v230_v14 = vperm.slane %v220_v13, %v225_v9 }
 0x22e   :  { %v234_v15 = vmul.f32 %v230_v14, %v422_v1 }
 0x230   :  { %236 = vst [vmem:[#allocation5 + $0x8] sm:$0xff] %v234_v15 }
 0x231   :  { %249 = dma.vmem_to_hbm [thread:$0]  %s242_s12, 256, %s244_s15, [#allocation4], %s374_s26, %s374_s26, %s375_s27  }
 0x232   :  { %369 = dma.done.wait [#allocation4], 256  }
 0x233   :  { %370 = vsyncadd [#allocation4], 4294967040 }
 0x234   :  { %371 = dma.done.wait [#allocation7], 32  }
 0x235   :  { %372 = vsyncadd [#allocation7], 4294967264 }
 0x236   :  { %269 = vsyncpa [#allocation3], 1 }
 0x237   :  { %270 = vsyncpa [#allocation4], 1 }
 0x238   :  { %271 = vsyncpa [#allocation7], 1 }

</bundles_post_ra>
